<compile_context>
chip_gen: v7x
topology: tpu7x:2x2x1
jax: 0.10.0
libtpu: 0.0.40
codegen_flags: <defaults>
</compile_context>

<pallas_src>
import functools
import math

import jax
import jax.numpy as jnp
import numpy as np
from jax import lax
from jax.experimental import pallas as pl
from jax.experimental.pallas import tpu as pltpu


def _log_softmax_classes(x):
    """log-softmax over axis 0 (classes live on the sublane axis)."""
    m = jnp.max(x, axis=0, keepdims=True)
    s = x - m
    return s - jnp.log(jnp.sum(jnp.exp(s), axis=0, keepdims=True))


def adapt_loss_kernel(troi_ref, sroi_ref, slane_ref, pred_ref, sconf_ref,
                      out_ref, *, iou_thresh, T):
    n = troi_ref.shape[1]                  # lanes in this block (multiple of 128)

    # ---- per-image IoU on a (K, n) tile -------------------------------------
    troi = troi_ref[...].astype(jnp.float32)            # (4, n) target boxes
    tx1 = troi[0:1, :]; ty1 = troi[1:2, :]
    tx2 = troi[2:3, :]; ty2 = troi[3:4, :]

    # Source boxes: slot k on sublanes, already broadcast across each image's K
    # lanes by the wrapper, so every lane only ever sees its own image's sources.
    sx1 = sroi_ref[0].astype(jnp.float32)                # (K, n)
    sy1 = sroi_ref[1].astype(jnp.float32)
    sx2 = sroi_ref[2].astype(jnp.float32)
    sy2 = sroi_ref[3].astype(jnp.float32)

    iw = jnp.maximum(jnp.minimum(sx2, tx2) - jnp.maximum(sx1, tx1), 0.0)
    ih = jnp.maximum(jnp.minimum(sy2, ty2) - jnp.maximum(sy1, ty1), 0.0)
    inter = iw * ih                                      # (K, n)
    area_t = (tx2 - tx1) * (ty2 - ty1)                   # (1, n)
    area_s = (sx2 - sx1) * (sy2 - sy1)                   # (K, n)
    union = area_t + area_s - inter
    # Exact divide: only K*n elements now, keeps threshold/tie-break identical
    # to the pure-JAX reference.
    iou = inter / jnp.maximum(union, 1e-10)              # (K, n)

    # ---- best source per target (first index on ties, like torch.max) -------
    best = jnp.max(iou, axis=0, keepdims=True)           # (1, n)
    src_lane = slane_ref[...]                            # (K, n) block-local lane of slot k
    first = jnp.min(jnp.where(iou >= best, src_lane, n),
                    axis=0, keepdims=True)               # (1, n) lane of the argmax
    matched = best > iou_thresh                          # (1, n)
    tgt = jnp.where(matched, first, -1)                  # fold threshold into the index

    # ---- gather matched teacher rows: one bf16 MXU matmul --------------------
    m = lax.broadcasted_iota(jnp.int32, (n, n), 0)
    onehot = jnp.where(m == tgt, 1.0, 0.0).astype(sconf_ref.dtype)   # (n, n)
    assign = jnp.dot(sconf_ref[...], onehot,
                     preferred_element_type=jnp.float32)             # (C, n) f32

    inv_t = 1.0 / T
    pred = pred_ref[...].astype(jnp.float32) * inv_t
    assign = assign * inv_t
    pos = jnp.sum(pred, axis=0, keepdims=True) > 0.0                  # (1, n)

    loss_elem = _log_softmax_classes(assign) * _log_softmax_classes(pred)
    loss_col = jnp.sum(loss_elem, axis=0, keepdims=True)              # (1, n)

    out_ref[0:1, :] = jnp.where(pos, loss_col, 0.0)
    out_ref[1:2, :] = pos.astype(jnp.float32)


def adapt_loss(rois, prediction, source_rois, source_conf, *,
               num_classes=21, negpos_ratio=3, iou_thresh=0.3, T=2.0,
               max_lanes_per_block=512):
    """Pallas implementation of AdaptLoss.forward.

    rois:        [B, 1, K, 4]
    prediction:  [B, K, C]   (any float dtype, e.g. bf16)
    source_rois: [B, 1, K, 4]
    source_conf: [B, K, C]   (any float dtype, e.g. bf16)
    returns scalar loss (float32).
    """
    del negpos_ratio  # unused in the reference forward pass
    B, _, K, _ = rois.shape
    C = prediction.shape[-1]
    assert C == num_classes

    r = rois[:, 0, :, :]            # (B, K, 4)
    s = source_rois[:, 0, :, :]     # (B, K, 4)
    p = prediction                  # (B, K, C)
    sc = source_conf                # (B, K, C)

    # ---- lane blocking: whole images per block, lane dim multiple of 128 ----
    N = B * K
    K_eff = K
    if N <= max_lanes_per_block:
        n_block = n_pad = ((N + 127) // 128) * 128
    else:
        base = math.lcm(K, 128)
        if base > max_lanes_per_block:
            # Awkward K: pad each image's roi slots to a multiple of 128 so
            # images never straddle a block boundary (zero slots never match:
            # IoU == 0 <= thresh; zero predictions give pos = False).
            K_eff = ((K + 127) // 128) * 128
            padK = ((0, 0), (0, K_eff - K), (0, 0))
            r = jnp.pad(r, padK); s = jnp.pad(s, padK)
            p = jnp.pad(p, padK); sc = jnp.pad(sc, padK)
            N = B * K_eff
            base = K_eff
        n_block = max(base, (max_lanes_per_block // base) * base)
        n_pad = ((N + n_block - 1) // n_block) * n_block
    num_blocks = n_pad // n_block

    # ---- lane-dense layouts (no dtype upcasts in the wrapper) ---------------
    troi = jnp.transpose(r, (2, 0, 1)).reshape(4, N)              # (4, N)
    # source rois broadcast per image: sroi_b[c, k, b*K+t] = s[b, k, c]
    sroi_b = jnp.broadcast_to(
        jnp.transpose(s, (2, 1, 0))[:, :, :, None],
        (4, K_eff, B, K_eff)).reshape(4, K_eff, N)
    # classes on sublanes, rois on lanes (XLA fuses these with the producers)
    pred_t = jnp.transpose(p.reshape(N, C))                       # (C, N)
    sconf_t = jnp.transpose(sc.reshape(N, C))                     # (C, N) native dtype

    if n_pad != N:  # zero padding: pos=False and IoU=0 for padded lanes
        troi = jnp.pad(troi, ((0, 0), (0, n_pad - N)))
        sroi_b = jnp.pad(sroi_b, ((0, 0), (0, 0), (0, n_pad - N)))
        pred_t = jnp.pad(pred_t, ((0, 0), (0, n_pad - N)))
        sconf_t = jnp.pad(sconf_t, ((0, 0), (0, n_pad - N)))

    # Block-local lane index of source slot k for every target lane j.  It is
    # identical for every block (n_block is a multiple of K_eff whenever there
    # are several blocks).  Out-of-range values in the padded tail are harmless:
    # they are only ever compared, never used to index memory.
    lanes = np.arange(n_block)
    src_lane = ((lanes // K_eff) * K_eff)[None, :] + np.arange(K_eff)[:, None]
    src_lane = jnp.asarray(src_lane.astype(np.int32))             # (K_eff, n_block)

    kernel = functools.partial(adapt_loss_kernel,
                               iou_thresh=float(iou_thresh), T=float(T))

    partials = pl.pallas_call(
        kernel,
        out_shape=jax.ShapeDtypeStruct((2, n_pad), jnp.float32),
        grid_spec=pltpu.PrefetchScalarGridSpec(
            num_scalar_prefetch=0,
            grid=(num_blocks,),
            in_specs=[
                pl.BlockSpec((4, n_block), lambda i: (0, i)),
                pl.BlockSpec((4, K_eff, n_block), lambda i: (0, 0, i)),
                pl.BlockSpec((K_eff, n_block), lambda i: (0, 0)),
                pl.BlockSpec((C, n_block), lambda i: (0, i)),
                pl.BlockSpec((C, n_block), lambda i: (0, i)),
            ],
            out_specs=pl.BlockSpec((2, n_block), lambda i: (0, i)),
        ),
        compiler_params=pltpu.CompilerParams(
            dimension_semantics=("parallel",),
            vmem_limit_bytes=32 * 1024 * 1024),
    )(troi, sroi_b, src_lane, pred_t, sconf_t)

    total = jnp.sum(partials[0, :])
    npos = jnp.sum(partials[1, :])
    # NaN when npos == 0, matching the reference's loss[pos].mean() behaviour.
    return total / (npos * C)


def adapt_loss_ref(rois, prediction, source_rois, source_conf,
                   iou_thresh=0.3, T=2.0):
    """Pure-JAX reference mirroring the PyTorch forward semantics."""
    C = prediction.shape[-1]
    r = rois[:, 0].astype(jnp.float32)          # (B, K, 4)
    s = source_rois[:, 0].astype(jnp.float32)   # (B, K, 4)

    ix1 = jnp.maximum(r[:, :, None, 0], s[:, None, :, 0])
    iy1 = jnp.maximum(r[:, :, None, 1], s[:, None, :, 1])
    ix2 = jnp.minimum(r[:, :, None, 2], s[:, None, :, 2])
    iy2 = jnp.minimum(r[:, :, None, 3], s[:, None, :, 3])
    inter = jnp.maximum(ix2 - ix1, 0.0) * jnp.maximum(iy2 - iy1, 0.0)
    area_t = (r[:, :, 2] - r[:, :, 0]) * (r[:, :, 3] - r[:, :, 1])
    area_s = (s[:, :, 2] - s[:, :, 0]) * (s[:, :, 3] - s[:, :, 1])
    union = area_t[:, :, None] + area_s[:, None, :] - inter
    iou = inter / jnp.maximum(union, 1e-10)

    best_iou = jnp.max(iou, axis=-1)
    best_idx = jnp.argmax(iou, axis=-1)
    assign = jnp.take_along_axis(source_conf.astype(jnp.float32),
                                 best_idx[..., None], axis=1)
    assign = jnp.where((best_iou > iou_thresh)[..., None], assign, 0.0)

    assign = assign.reshape(-1, C) / T
    pred = prediction.astype(jnp.float32).reshape(-1, C) / T
    pos = jnp.sum(pred, axis=1) > 0
    loss = jax.nn.log_softmax(assign, axis=-1) * jax.nn.log_softmax(pred, axis=-1)
    mask = pos[:, None].astype(jnp.float32)
    return jnp.sum(loss * mask) / (jnp.sum(mask) * C)


if __name__ == "__main__":
    B, K, C = 2, 8, 21
    key = jax.random.PRNGKey(0)
    k1, k2, k3, k4 = jax.random.split(key, 4)

    def make_boxes(k, batch, n):
        kc, ks = jax.random.split(k)
        ctr = jax.random.uniform(kc, (batch, 1, n, 2), minval=0.2, maxval=0.8)
        sz = jax.random.uniform(ks, (batch, 1, n, 2), minval=0.05, maxval=0.3)
        return jnp.concatenate([ctr - sz / 2.0, ctr + sz / 2.0], axis=-1)

    rois = make_boxes(k1, B, K)                                           # [B, 1, K, 4] f32
    source_rois = make_boxes(k2, B, K)                                    # [B, 1, K, 4] f32
    # dominant tensors kept in bf16 end-to-end (no wrapper upcast)
    prediction = jax.random.normal(k3, (B, K, C),
                                   dtype=jnp.float32).astype(jnp.bfloat16)
    source_conf = jax.nn.softmax(
        2.0 * jax.random.normal(k4, (B, K, C), dtype=jnp.float32),
        axis=-1).astype(jnp.bfloat16)

    loss = adapt_loss(rois, prediction, source_rois, source_conf,
                      num_classes=C, iou_thresh=0.3, T=2.0)
    jax.block_until_ready(loss)

    ref = adapt_loss_ref(rois, prediction, source_rois, source_conf,
                         iou_thresh=0.3, T=2.0)
    assert jnp.allclose(loss, ref, atol=1e-4, rtol=1e-4, equal_nan=True), (loss, ref)
    print("KERNEL_OK")
</pallas_src>

<mosaic_0001>
module attributes {stable_mosaic.version = 11 : i64} {
  func.func @adapt_loss_kernel(%arg0: i32, %arg1: memref<4x128xf32, #tpu.memory_space<vmem>>, %arg2: memref<4x8x128xf32, #tpu.memory_space<vmem>>, %arg3: memref<8x128xi32, #tpu.memory_space<vmem>>, %arg4: memref<21x128xbf16, #tpu.memory_space<vmem>>, %arg5: memref<21x128xbf16, #tpu.memory_space<vmem>>, %arg6: memref<2x128xf32, #tpu.memory_space<vmem>>) attributes {dimension_semantics = [#tpu.dimension_semantics<parallel>], iteration_bounds = array<i64: 1>, scalar_prefetch = 0 : i64, scratch_operands = 0 : i64, tpu.core_type = #tpu.core_type<tc>, window_params = [{transform_indices = @transform_0, window_bounds = array<i64: 4, 128>}, {transform_indices = @transform_1, window_bounds = array<i64: 4, 8, 128>}, {pipeline_mode = #tpu.pipeline_mode<synchronous>, transform_indices = @transform_2, window_bounds = array<i64: 8, 128>}, {transform_indices = @transform_3, window_bounds = array<i64: 21, 128>}, {transform_indices = @transform_4, window_bounds = array<i64: 21, 128>}, {transform_indices = @transform_5, window_bounds = array<i64: 2, 128>}]} {
    %c0 = arith.constant 0 : index
    %c0_0 = arith.constant 0 : index
    %0 = vector.load %arg1[%c0, %c0_0] : memref<4x128xf32, #tpu.memory_space<vmem>>, vector<4x128xf32>
    %1 = vector.extract_strided_slice %0 {offsets = [0, 0], sizes = [1, 128], strides = [1, 1]} : vector<4x128xf32> to vector<1x128xf32>
    %2 = vector.extract_strided_slice %0 {offsets = [1, 0], sizes = [1, 128], strides = [1, 1]} : vector<4x128xf32> to vector<1x128xf32>
    %3 = vector.extract_strided_slice %0 {offsets = [2, 0], sizes = [1, 128], strides = [1, 1]} : vector<4x128xf32> to vector<1x128xf32>
    %4 = vector.extract_strided_slice %0 {offsets = [3, 0], sizes = [1, 128], strides = [1, 1]} : vector<4x128xf32> to vector<1x128xf32>
    %c0_1 = arith.constant 0 : index
    %c0_2 = arith.constant 0 : index
    %c0_3 = arith.constant 0 : index
    %5 = vector.load %arg2[%c0_1, %c0_2, %c0_3] : memref<4x8x128xf32, #tpu.memory_space<vmem>>, vector<1x8x128xf32>
    %6 = vector.shape_cast %5 : vector<1x8x128xf32> to vector<8x128xf32>
    %c1 = arith.constant 1 : index
    %c0_4 = arith.constant 0 : index
    %c0_5 = arith.constant 0 : index
    %7 = vector.load %arg2[%c1, %c0_4, %c0_5] : memref<4x8x128xf32, #tpu.memory_space<vmem>>, vector<1x8x128xf32>
    %8 = vector.shape_cast %7 : vector<1x8x128xf32> to vector<8x128xf32>
    %c2 = arith.constant 2 : index
    %c0_6 = arith.constant 0 : index
    %c0_7 = arith.constant 0 : index
    %9 = vector.load %arg2[%c2, %c0_6, %c0_7] : memref<4x8x128xf32, #tpu.memory_space<vmem>>, vector<1x8x128xf32>
    %10 = vector.shape_cast %9 : vector<1x8x128xf32> to vector<8x128xf32>
    %c3 = arith.constant 3 : index
    %c0_8 = arith.constant 0 : index
    %c0_9 = arith.constant 0 : index
    %11 = vector.load %arg2[%c3, %c0_8, %c0_9] : memref<4x8x128xf32, #tpu.memory_space<vmem>>, vector<1x8x128xf32>
    %12 = vector.shape_cast %11 : vector<1x8x128xf32> to vector<8x128xf32>
    %13 = vector.broadcast %3 : vector<1x128xf32> to vector<8x128xf32>
    %14 = arith.minimumf %10, %13 : vector<8x128xf32>
    %15 = vector.broadcast %1 : vector<1x128xf32> to vector<8x128xf32>
    %16 = arith.maximumf %6, %15 : vector<8x128xf32>
    %17 = arith.subf %14, %16 : vector<8x128xf32>
    %cst = arith.constant 0.000000e+00 : f32
    %18 = vector.broadcast %cst : f32 to vector<8x128xf32>
    %19 = arith.maximumf %17, %18 : vector<8x128xf32>
    %20 = vector.broadcast %4 : vector<1x128xf32> to vector<8x128xf32>
    %21 = arith.minimumf %12, %20 : vector<8x128xf32>
    %22 = vector.broadcast %2 : vector<1x128xf32> to vector<8x128xf32>
    %23 = arith.maximumf %8, %22 : vector<8x128xf32>
    %24 = arith.subf %21, %23 : vector<8x128xf32>
    %cst_10 = arith.constant 0.000000e+00 : f32
    %25 = vector.broadcast %cst_10 : f32 to vector<8x128xf32>
    %26 = arith.maximumf %24, %25 : vector<8x128xf32>
    %27 = arith.mulf %19, %26 : vector<8x128xf32>
    %28 = arith.subf %3, %1 : vector<1x128xf32>
    %29 = arith.subf %4, %2 : vector<1x128xf32>
    %30 = arith.mulf %28, %29 : vector<1x128xf32>
    %31 = arith.subf %10, %6 : vector<8x128xf32>
    %32 = arith.subf %12, %8 : vector<8x128xf32>
    %33 = arith.mulf %31, %32 : vector<8x128xf32>
    %34 = vector.broadcast %30 : vector<1x128xf32> to vector<8x128xf32>
    %35 = arith.addf %34, %33 : vector<8x128xf32>
    %36 = arith.subf %35, %27 : vector<8x128xf32>
    %cst_11 = arith.constant 1.000000e-10 : f32
    %37 = vector.broadcast %cst_11 : f32 to vector<8x128xf32>
    %38 = arith.maximumf %36, %37 : vector<8x128xf32>
    %39 = arith.divf %27, %38 : vector<8x128xf32>
    %cst_12 = arith.constant dense<0xFF800000> : vector<128xf32>
    %40 = vector.multi_reduction <maximumf>, %39, %cst_12 [0] : vector<8x128xf32> to vector<128xf32>
    %41 = vector.shape_cast %40 : vector<128xf32> to vector<1x128xf32>
    %c0_13 = arith.constant 0 : index
    %c0_14 = arith.constant 0 : index
    %42 = vector.load %arg3[%c0_13, %c0_14] : memref<8x128xi32, #tpu.memory_space<vmem>>, vector<8x128xi32>
    %43 = vector.broadcast %41 : vector<1x128xf32> to vector<8x128xf32>
    %44 = arith.cmpf oge, %39, %43 : vector<8x128xf32>
    %c128_i32 = arith.constant 128 : i32
    %45 = vector.broadcast %c128_i32 : i32 to vector<8x128xi32>
    %46 = arith.select %44, %42, %45 : vector<8x128xi1>, vector<8x128xi32>
    %cst_15 = arith.constant dense<2147483647> : vector<128xi32>
    %47 = vector.multi_reduction <minsi>, %46, %cst_15 [0] : vector<8x128xi32> to vector<128xi32>
    %48 = vector.shape_cast %47 : vector<128xi32> to vector<1x128xi32>
    %cst_16 = arith.constant 3.000000e-01 : f32
    %49 = vector.broadcast %cst_16 : f32 to vector<1x128xf32>
    %50 = arith.cmpf ogt, %41, %49 : vector<1x128xf32>
    %c-1_i32 = arith.constant -1 : i32
    %51 = vector.broadcast %c-1_i32 : i32 to vector<1x128xi32>
    %52 = arith.select %50, %48, %51 : vector<1x128xi1>, vector<1x128xi32>
    %53 = tpu.iota {dimensions = array<i32: 0>} : vector<128x128xi32>
    %54 = vector.broadcast %52 : vector<1x128xi32> to vector<128x128xi32>
    %55 = arith.cmpi eq, %53, %54 : vector<128x128xi32>
    %cst_17 = arith.constant 1.000000e+00 : f32
    %cst_18 = arith.constant 0.000000e+00 : f32
    %56 = vector.broadcast %cst_17 : f32 to vector<128x128xf32>
    %57 = vector.broadcast %cst_18 : f32 to vector<128x128xf32>
    %58 = arith.select %55, %56, %57 : vector<128x128xi1>, vector<128x128xf32>
    %59 = arith.truncf %58 : vector<128x128xf32> to vector<128x128xbf16>
    %c0_19 = arith.constant 0 : index
    %c0_20 = arith.constant 0 : index
    %60 = vector.load %arg5[%c0_19, %c0_20] : memref<21x128xbf16, #tpu.memory_space<vmem>>, vector<21x128xbf16>
    %cst_21 = arith.constant dense<0.000000e+00> : vector<21x128xf32>
    %61 = tpu.matmul %60, %59, %cst_21 {dimension_numbers = #tpu.dot_dimension_numbers<[1], [0], [0], [1], [0, 0, 1, 1], [], []>} : vector<21x128xbf16>, vector<128x128xbf16>, vector<21x128xf32> -> vector<21x128xf32>
    %c0_22 = arith.constant 0 : index
    %c0_23 = arith.constant 0 : index
    %62 = vector.load %arg4[%c0_22, %c0_23] : memref<21x128xbf16, #tpu.memory_space<vmem>>, vector<21x128xbf16>
    %63 = arith.extf %62 : vector<21x128xbf16> to vector<21x128xf32>
    %cst_24 = arith.constant 5.000000e-01 : f32
    %64 = vector.broadcast %cst_24 : f32 to vector<21x128xf32>
    %65 = arith.mulf %63, %64 : vector<21x128xf32>
    %cst_25 = arith.constant 5.000000e-01 : f32
    %66 = vector.broadcast %cst_25 : f32 to vector<21x128xf32>
    %67 = arith.mulf %61, %66 : vector<21x128xf32>
    %cst_26 = arith.constant dense<0.000000e+00> : vector<128xf32>
    %68 = vector.multi_reduction <add>, %65, %cst_26 [0] : vector<21x128xf32> to vector<128xf32>
    %69 = vector.shape_cast %68 : vector<128xf32> to vector<1x128xf32>
    %cst_27 = arith.constant 0.000000e+00 : f32
    %70 = vector.broadcast %cst_27 : f32 to vector<1x128xf32>
    %71 = arith.cmpf ogt, %69, %70 : vector<1x128xf32>
    %cst_28 = arith.constant dense<0xFF800000> : vector<128xf32>
    %72 = vector.multi_reduction <maximumf>, %67, %cst_28 [0] : vector<21x128xf32> to vector<128xf32>
    %73 = vector.shape_cast %72 : vector<128xf32> to vector<1x128xf32>
    %74 = vector.broadcast %73 : vector<1x128xf32> to vector<21x128xf32>
    %75 = arith.subf %67, %74 : vector<21x128xf32>
    %76 = math.exp %75 : vector<21x128xf32>
    %cst_29 = arith.constant dense<0.000000e+00> : vector<128xf32>
    %77 = vector.multi_reduction <add>, %76, %cst_29 [0] : vector<21x128xf32> to vector<128xf32>
    %78 = vector.shape_cast %77 : vector<128xf32> to vector<1x128xf32>
    %79 = math.log %78 : vector<1x128xf32>
    %80 = vector.broadcast %79 : vector<1x128xf32> to vector<21x128xf32>
    %81 = arith.subf %75, %80 : vector<21x128xf32>
    %cst_30 = arith.constant dense<0xFF800000> : vector<128xf32>
    %82 = vector.multi_reduction <maximumf>, %65, %cst_30 [0] : vector<21x128xf32> to vector<128xf32>
    %83 = vector.shape_cast %82 : vector<128xf32> to vector<1x128xf32>
    %84 = vector.broadcast %83 : vector<1x128xf32> to vector<21x128xf32>
    %85 = arith.subf %65, %84 : vector<21x128xf32>
    %86 = math.exp %85 : vector<21x128xf32>
    %cst_31 = arith.constant dense<0.000000e+00> : vector<128xf32>
    %87 = vector.multi_reduction <add>, %86, %cst_31 [0] : vector<21x128xf32> to vector<128xf32>
    %88 = vector.shape_cast %87 : vector<128xf32> to vector<1x128xf32>
    %89 = math.log %88 : vector<1x128xf32>
    %90 = vector.broadcast %89 : vector<1x128xf32> to vector<21x128xf32>
    %91 = arith.subf %85, %90 : vector<21x128xf32>
    %92 = arith.mulf %81, %91 : vector<21x128xf32>
    %cst_32 = arith.constant dense<0.000000e+00> : vector<128xf32>
    %93 = vector.multi_reduction <add>, %92, %cst_32 [0] : vector<21x128xf32> to vector<128xf32>
    %94 = vector.shape_cast %93 : vector<128xf32> to vector<1x128xf32>
    %cst_33 = arith.constant 0.000000e+00 : f32
    %95 = vector.broadcast %cst_33 : f32 to vector<1x128xf32>
    %96 = arith.select %71, %94, %95 : vector<1x128xi1>, vector<1x128xf32>
    %c0_34 = arith.constant 0 : index
    %c0_35 = arith.constant 0 : index
    %97 = vector.load %arg6[%c0_34, %c0_35] : memref<2x128xf32, #tpu.memory_space<vmem>>, vector<1x128xf32>
    tpu.vector_store %arg6[%c0_34, %c0_35], %96 {strides = array<i32>} : memref<2x128xf32, #tpu.memory_space<vmem>>, vector<1x128xf32>,
    %98 = arith.extui %71 : vector<1x128xi1> to vector<1x128xi32>
    %99 = arith.sitofp %98 : vector<1x128xi32> to vector<1x128xf32>
    %c1_36 = arith.constant 1 : index
    %c0_37 = arith.constant 0 : index
    %100 = vector.load %arg6[%c1_36, %c0_37] : memref<2x128xf32, #tpu.memory_space<vmem>>, vector<1x128xf32>
    tpu.vector_store %arg6[%c1_36, %c0_37], %99 {strides = array<i32>} : memref<2x128xf32, #tpu.memory_space<vmem>>, vector<1x128xf32>,
    return
  }
  func.func @transform_0(%arg0: i32) -> (i32, i32) {
    %c0_i32 = arith.constant 0 : i32
    %c0_i32_0 = arith.constant 0 : i32
    return %c0_i32, %arg0 : i32, i32
  }
  func.func @transform_1(%arg0: i32) -> (i32, i32, i32) {
    %c0_i32 = arith.constant 0 : i32
    %c0_i32_0 = arith.constant 0 : i32
    %c0_i32_1 = arith.constant 0 : i32
    return %c0_i32, %c0_i32_0, %arg0 : i32, i32, i32
  }
  func.func @transform_2(%arg0: i32) -> (i32, i32) {
    %c0_i32 = arith.constant 0 : i32
    %c0_i32_0 = arith.constant 0 : i32
    %c0_i32_1 = arith.constant 0 : i32
    return %c0_i32, %c0_i32_0 : i32, i32
  }
  func.func @transform_3(%arg0: i32) -> (i32, i32) {
    %c0_i32 = arith.constant 0 : i32
    %c0_i32_0 = arith.constant 0 : i32
    return %c0_i32, %arg0 : i32, i32
  }
  func.func @transform_4(%arg0: i32) -> (i32, i32) {
    %c0_i32 = arith.constant 0 : i32
    %c0_i32_0 = arith.constant 0 : i32
    return %c0_i32, %arg0 : i32, i32
  }
  func.func @transform_5(%arg0: i32) -> (i32, i32) {
    %c0_i32 = arith.constant 0 : i32
    %c0_i32_0 = arith.constant 0 : i32
    return %c0_i32, %arg0 : i32, i32
  }
}

</mosaic_0001>

<bundles_post_ra>
// kernel: tpu_custom_call.1
= control target key start
LH: loop header
LB: loop body
LE: loop exit
PB: predicated region body
PF: predicated region fallthrough
CT: control target
= control target key end

     0   :  { %10 = vsyncpa [#allocation3], 0  ;;  %s746_s0 = inlined_call_operand.hbm [shape: f32[4,128], index: 0, kind: input, shape index: {}]   ;;  %s747_s1 = inlined_call_operand.hbm [shape: f32[4,8,128], index: 1, kind: input, shape index: {}]   ;;  %s748_s2 = inlined_call_operand.hbm [shape: s32[8,128], index: 2, kind: input, shape index: {}]   ;;  %s749_s3 = inlined_call_operand.hbm [shape: bf16[21,128], index: 3, kind: input, shape index: {}]   ;;  %s750_s4 = inlined_call_operand.vmem [shape: bf16[21,128], index: 4, kind: input, shape index: {}]   ;;  %s751_s5 = inlined_call_operand.hbm [shape: f32[2,128], index: 5, kind: output, shape index: {}]  }
   0x1   :  { %11 = vsyncpa [#allocation6], 0 }
   0x2   :  { %12 = vsyncpa [#allocation9], 0 }
   0x3   :  { %13 = vsyncpa [#allocation4], 0  ;;  %s587_s18 = smov [#allocation5]   ;;  %s469_s22 = scalar_lea.hbm %s747_s1, 512 }
   0x4   :  { %s29_s19 = sshll.u32 %s587_s18, 4  ;;  %p470_p0 = scmp.ne.s32.totalorder %s747_s1, %s469_s22  ;;  %s30_s19 = int_to_ptr.vmem [resolvable:$true] %s29_s19 }
   0x5   :  { %p473_p1 = scmp.lt.u32.totalorder %s469_s22, %s747_s1 }
   0x7   :  { %p475_p2 = pnand %p473_p1, %p470_p0 }
   0x9   :  { %478 = shalt.err (!%p475_p2)
}
   0xa   :  { %s479_s27 = scalar_lea.vmem %s30_s19, 512  ;;  %p484_p4 = scmp.lt.s32.totalorder %s30_s19, %s30_s19 }
   0xb   :  { %p480_p3 = scmp.ne.s32.totalorder %s30_s19, %s479_s27  ;;  %p485_p5 = scmp.lt.s32.totalorder %s479_s27, %s479_s27 }
   0xd   :  { %p486_p6 = por %p485_p5, %p484_p4 }
   0xf   :  { %p487_p7 = pnand %p486_p6, %p480_p3 }
  0x11   :  { %490 = shalt.err (!%p487_p7)
}
  0x12   :  { %s588_s28 = smov 128   ;;  %s589_s29 = smov 8  }
  0x13   :  { %35 = dma.hbm_to_vmem [thread:$0]  %s747_s1, 512, %s30_s19, [#allocation6], %s588_s28, %s588_s28, %s589_s29  }
  0x14   :  { %s590_s7 = smov [#allocation2]   ;;  %s591_s9 = smov [#allocation7]  }
  0x15   :  { %s20_s8 = sshll.u32 %s590_s7, 4  ;;  %s42_s10 = sshll.u32 %s591_s9, 4  ;;  %s21_s8 = int_to_ptr.vmem [resolvable:$true] %s20_s8  ;;  %s43_s10 = int_to_ptr.vmem [resolvable:$true] %s42_s10 }
  0x16   :  { %s491_s13 = scalar_lea.hbm %s746_s0, 64 }
  0x17   :  { %p492_p8 = scmp.ne.s32.totalorder %s746_s0, %s491_s13  ;;  %p495_p9 = scmp.lt.u32.totalorder %s491_s13, %s746_s0 }
  0x19   :  { %p497_p10 = pnand %p495_p9, %p492_p8 }
  0x1b   :  { %500 = shalt.err (!%p497_p10)
}
  0x1c   :  { %s501_s1 = scalar_lea.vmem %s21_s8, 64  ;;  %p506_p12 = scmp.lt.s32.totalorder %s21_s8, %s21_s8 }
  0x1d   :  { %p502_p11 = scmp.ne.s32.totalorder %s21_s8, %s501_s1  ;;  %p507_p13 = scmp.lt.s32.totalorder %s501_s1, %s501_s1 }
  0x1f   :  { %p508_p0 = por %p507_p13, %p506_p12 }
  0x21   :  { %p509_p1 = pnand %p508_p0, %p502_p11 }
  0x23   :  { %512 = shalt.err (!%p509_p1)
}
  0x24   :  { %23 = dma.hbm_to_vmem [thread:$0]  %s746_s0, 64, %s21_s8, [#allocation3]  }
  0x25   :  { %s513_s22 = scalar_lea.hbm %s748_s2, 128 }
  0x26   :  { %p514_p2 = scmp.ne.s32.totalorder %s748_s2, %s513_s22  ;;  %p517_p3 = scmp.lt.u32.totalorder %s513_s22, %s748_s2 }
  0x28   :  { %p519_p4 = pnand %p517_p3, %p514_p2 }
  0x2a   :  { %522 = shalt.err (!%p519_p4)
}
  0x2b   :  { %s523_s27 = scalar_lea.vmem %s43_s10, 128  ;;  %p528_p6 = scmp.lt.s32.totalorder %s43_s10, %s43_s10 }
  0x2c   :  { %p524_p5 = scmp.ne.s32.totalorder %s43_s10, %s523_s27  ;;  %p529_p7 = scmp.lt.s32.totalorder %s523_s27, %s523_s27 }
  0x2e   :  { %p530_p8 = por %p529_p7, %p528_p6 }
  0x30   :  { %p531_p9 = pnand %p530_p8, %p524_p5 }
  0x32   :  { %534 = shalt.err (!%p531_p9)
}
  0x33   :  { %45 = dma.hbm_to_vmem [thread:$0]  %s748_s2, 128, %s43_s10, [#allocation6]  }
  0x34   :  { %s592_s29 = smov [#allocation8]   ;;  %s535_s8 = scalar_lea.hbm %s749_s3, 192 }
  0x35   :  { %s51_s30 = sshll.u32 %s592_s29, 4  ;;  %p536_p10 = scmp.ne.s32.totalorder %s749_s3, %s535_s8  ;;  %s52_s30 = int_to_ptr.vmem [resolvable:$true] %s51_s30 }
  0x36   :  { %p539_p11 = scmp.lt.u32.totalorder %s535_s8, %s749_s3 }
  0x38   :  { %p541_p12 = pnand %p539_p11, %p536_p10 }
  0x3a   :  { %544 = shalt.err (!%p541_p12)
}
  0x3b   :  { %s545_s14 = scalar_lea.vmem %s52_s30, 192  ;;  %p550_p0 = scmp.lt.s32.totalorder %s52_s30, %s52_s30 }
  0x3c   :  { %p546_p13 = scmp.ne.s32.totalorder %s52_s30, %s545_s14  ;;  %p551_p1 = scmp.lt.s32.totalorder %s545_s14, %s545_s14 }
  0x3e   :  { %p552_p2 = por %p551_p1, %p550_p0 }
  0x40   :  { %p553_p3 = pnand %p552_p2, %p546_p13 }
  0x42   :  { %556 = shalt.err (!%p553_p3)
}
  0x43   :  { %s593_s2 = smov 64   ;;  %s594_s10 = smov 4  }
  0x44   :  { %57 = dma.hbm_to_vmem [thread:$0]  %s749_s3, 192, %s52_s30, [#allocation9], %s593_s2, %s593_s2, %s594_s10  }
  0x45   :  { %579 = dma.done.wait [#allocation3], 64  }
  0x46   :  { %580 = vsyncadd [#allocation3], 4294967232 }
  0x47   :  { %581 = dma.done.wait [#allocation6], 640  }
  0x48   :  { %582 = vsyncadd [#allocation6], 4294966656 }
  0x49   :  { %583 = dma.done.wait [#allocation9], 192  }
  0x4a   :  { %584 = vsyncadd [#allocation9], 4294967104  ;;  %v81_v0 = vlaneseq  ;;  %v73_v6 = vld [vmem:[#allocation2] sm:$0xf]  ;;  %v74_v7 = vld [vmem:[#allocation5] sm:$0xff] }
  0x4b   :  { %v76_v8 = vld [vmem:[#allocation5 + $0x8] sm:$0xff]  ;;  %v78_v9 = vld [vmem:[#allocation5 + $0x10] sm:$0xff]  ;;  %v80_v10 = vld [vmem:[#allocation5 + $0x18] sm:$0xff]  ;;  %v107_v15 = vrot.slane %v73_v6, 6  ;;  %v595_v58 = vmov 1.0|1.0  }
  0x4c   :  { %v676_v1 = vshrl.u32 %v81_v0, 7  ;;  %v449_v20 = vld [vmem:[%s750_s4] sm:$0xff]   ;;  %v114_v22 = vsub.f32 %v78_v9, %v74_v7  ;;  %v115_v23 = vsub.f32 %v80_v10, %v76_v8  ;;  %v132_v44 = vld [vmem:[#allocation7] sm:$0xff] }
  0x4d   :  { %v109_v21 = vsub.f32 %v73_v6, %v107_v15  ;;  %434 = vmatprep.mubr.bf16.mxu0 %v449_v20 }
  0x4e   :  { %v83_v2 = vsub.s32 2, %v676_v1  ;;  %v88_v3 = vsub.s32 0, %v676_v1  ;;  %v95_v4 = vsub.s32 3, %v676_v1  ;;  %v100_v5 = vsub.s32 1, %v676_v1 }
  0x4f   :  { %v111_v26 = vrot.slane %v109_v21, 1  ;;  %v116_v30 = vmul.f32 %v115_v23, %v114_v22  ;;  %v148_v51 = vadd.s32 8, %v676_v1  ;;  %v149_v52 = vadd.s32 16, %v676_v1 }
  0x50   :  { %v84_v11 = vrot.slane %v73_v6, %v83_v2  ;;  %v89_v12 = vrot.slane %v73_v6, %v88_v3  ;;  %v96_v13 = vrot.slane %v73_v6, %v95_v4  ;;  %v101_v14 = vrot.slane %v73_v6, %v100_v5  ;;  %v450_v6 = vld [vmem:[%s750_s4 + $0x8] ss:$0 sps:$4 sm:$0x77]   ;;  %s597_s4 = smov [#allocation10]  }
  0x51   :  { %v113_v29 = vmul.f32 %v111_v26, %v109_v21  ;;  %v150_v53 = vadd.s32 24, %v676_v1  ;;  %v151_v55 = vadd.s32 32, %v676_v1  ;;  %v152_v56 = vadd.s32 40, %v676_v1  ;;  %s374_s19 = sshll.u32 %s597_s4, 4  ;;  %s375_s19 = int_to_ptr.vmem [resolvable:$true] %s374_s19 }
  0x52   :  { %v85_v16 = vmin.f32 %v78_v9, %v84_v11  ;;  %v90_v17 = vmax.f32 %v74_v7, %v89_v12  ;;  %v97_v18 = vmin.f32 %v80_v10, %v96_v13  ;;  %v102_v19 = vmax.f32 %v76_v8, %v101_v14  ;;  %v405_v7 = vld [vmem:[#allocation8] sm:$0xff]   ;;  %s557_s20 = scalar_lea.vmem %s375_s19, 32  ;;  %p562_p5 = scmp.lt.s32.totalorder %s375_s19, %s375_s19 }
  0x53   :  { %v120_v32 = vrot.slane %v113_v29, %v83_v2  ;;  %v153_v59 = vadd.s32 48, %v676_v1  ;;  %v154_v60 = vadd.s32 56, %v676_v1  ;;  %v155_v61 = vadd.s32 64, %v676_v1  ;;  %p558_p4 = scmp.ne.s32.totalorder %s375_s19, %s557_s20  ;;  %p563_p6 = scmp.lt.s32.totalorder %s557_s20, %s557_s20 }
  0x54   :  { %v91_v24 = vsub.f32 %v85_v16, %v90_v17  ;;  %v103_v25 = vsub.f32 %v97_v18, %v102_v19  ;;  %v156_v62 = vadd.s32 72, %v676_v1  ;;  %v157_v63 = vadd.s32 80, %v676_v1 }
  0x55   :  { %v121_v33 = vadd.f32 %v120_v32, %v116_v30  ;;  %v158_v0 = vadd.s32 88, %v676_v1  ;;  %v159_v2 = vadd.s32 96, %v676_v1  ;;  %v160_v3 = vadd.s32 104, %v676_v1  ;;  %p564_p7 = por %p563_p6, %p562_p5 }
  0x56   :  { %v92_v27 = vmax.f32 %v91_v24, 0.0  ;;  %v104_v28 = vmax.f32 %v103_v25, 0.0  ;;  %v161_v4 = vadd.s32 112, %v676_v1  ;;  %v162_v5 = vadd.s32 120, %v676_v1 }
  0x57   :  { %v406_v8 = vunpack.c.l.bf16 %v405_v7  ;;  %v407_v9 = vunpack.c.h.bf16 %v405_v7  ;;  %p565_p8 = pnand %p564_p7, %p558_p4 }
  0x58   :  { %v105_v31 = vmul.f32 %v104_v28, %v92_v27 }
  0x59   :  { %v270_v11 = vmul.f32 0.5, %v406_v8  ;;  %v271_v12 = vmul.f32 0.5, %v407_v9 }
  0x5a   :  { %v122_v34 = vsub.f32 %v121_v33, %v105_v31 }
  0x5b   :  { %v320_v14 = vmax.f32 %v270_v11, %v271_v12 }
  0x5c   :  { %v123_v35 = vmax.f32 %v122_v34, 1e-10 }
  0x5e   :  { %451 = vrcp.f32 %v123_v35 }
  0x68   :  { %v452_v36 = vpop.eup %451 }
  0x69   :  { %v125_v37 = vmul.f32 %v452_v36, %v105_v31 }
  0x6b   :  { %v126_v38 = vrot.slane %v125_v37, 4 }
  0x6d   :  { %v127_v39 = vmax.f32 %v125_v37, %v126_v38 }
  0x6f   :  { %v128_v40 = vrot.slane %v127_v39, 2 }
  0x71   :  { %v129_v41 = vmax.f32 %v127_v39, %v128_v40 }
  0x73   :  { %v130_v42 = vrot.slane %v129_v41, 1 }
  0x75   :  { %v131_v43 = vmax.f32 %v129_v41, %v130_v42 }
  0x77   :  { %vm133_vm0 = vcmp.ge.f32.partialorder %v125_v37, %v131_v43  ;;  %vm144_vm3 = vcmp.gt.f32.partialorder %v131_v43, 0.3 }
  0x78   :  { %v134_v45 = vsel %vm133_vm0, %v132_v44, 128 }
  0x79   :  { %v135_v46 = vrot.slane %v134_v45, 4 }
  0x7b   :  { %vm136_vm1 = vcmp.lt.s32.totalorder %v134_v45, %v135_v46 }
  0x7c   :  { %v137_v47 = vsel %vm136_vm1, %v134_v45, %v135_v46  ;;  %v276_v46 = vadd.f32 %v271_v12, %v270_v11 }
  0x7d   :  { %v138_v48 = vrot.slane %v137_v47, 2 }
  0x7f   :  { %vm139_vm2 = vcmp.lt.s32.totalorder %v137_v47, %v138_v48 }
  0x80   :  { %v140_v49 = vsel %vm139_vm2, %v137_v47, %v138_v48 }
  0x81   :  { %v141_v50 = vrot.slane %v140_v49, 1 }
  0x83   :  { %vm142_vm4 = vcmp.lt.s32.totalorder %v140_v49, %v141_v50 }
  0x84   :  { %v143_v54 = vsel %vm142_vm4, %v140_v49, %v141_v50 }
  0x85   :  { %v145_v57 = vsel %vm144_vm3, %v143_v54, 4294967295 }
  0x86   :  { %vm163_vm5 = vcmp.eq.s32.totalorder %v676_v1, %v145_v57  ;;  %vm164_vm6 = vcmp.eq.s32.totalorder %v148_v51, %v145_v57  ;;  %vm165_vm7 = vcmp.eq.s32.totalorder %v149_v52, %v145_v57  ;;  %vm166_vm8 = vcmp.eq.s32.totalorder %v150_v53, %v145_v57  ;;  %v266_v1 = vld [vmem:[#allocation8 + $0x8] sm:$0x7] }
  0x87   :  { %vm387_vm9 = vmpackc.low %vm164_vm6, %vm163_vm5  ;;  %vm167_vm11 = vcmp.eq.s32.totalorder %v151_v55, %v145_v57  ;;  %vm168_vm12 = vcmp.eq.s32.totalorder %v152_v56, %v145_v57  ;;  %vm169_vm14 = vcmp.eq.s32.totalorder %v153_v59, %v145_v57  ;;  %vm170_vm15 = vcmp.eq.s32.totalorder %v154_v60, %v145_v57 }
  0x88   :  { %418 = vmatprep.subr.msk.bf16.mxu0 %vm387_vm9, %v595_v58  ;;  %vm389_vm10 = vmpackc.low %vm166_vm8, %vm165_vm7  ;;  %vm171_vm1 = vcmp.eq.s32.totalorder %v155_v61, %v145_v57  ;;  %vm172_vm2 = vcmp.eq.s32.totalorder %v156_v62, %v145_v57  ;;  %vm173_vm4 = vcmp.eq.s32.totalorder %v157_v63, %v145_v57  ;;  %vm174_vm5 = vcmp.eq.s32.totalorder %v158_v0, %v145_v57 }
  0x89   :  { %419 = vmatpush3.bf16.msk.msra.mxu0 %vm387_vm9, %v595_v58  ;;  %vm391_vm13 = vmpackc.low %vm168_vm12, %vm167_vm11  ;;  %vm175_vm7 = vcmp.eq.s32.totalorder %v159_v2, %v145_v57  ;;  %vm176_vm8 = vcmp.eq.s32.totalorder %v160_v3, %v145_v57  ;;  %vm178_vm11 = vcmp.eq.s32.totalorder %v162_v5, %v145_v57  ;;  %v269_v10 = vunpack.c.l.bf16 %v266_v1 }
  0x8a   :  { %420 = vmatprep.subr.msk.bf16.mxu0 %vm389_vm10, %v595_v58  ;;  %vm393_vm0 = vmpackc.low %vm170_vm15, %vm169_vm14  ;;  %v596_v55 = vmov 0.0  }
  0x8b   :  { %vm395_vm3 = vmpackc.low %vm172_vm2, %vm171_vm1  ;;  %v272_v13 = vmul.f32 0.5, %v269_v10 }
  0x8c   :  { %vm397_vm6 = vmpackc.low %vm174_vm5, %vm173_vm4 }
  0x8d   :  { %421 = vmatpush3.bf16.msk.msra.mxu0 %vm389_vm10, %v595_v58  ;;  %vm399_vm9 = vmpackc.low %vm176_vm8, %vm175_vm7  ;;  %vm177_vm10 = vcmp.eq.s32.totalorder %v161_v4, %v145_v57 }
  0x8e   :  { %422 = vmatprep.subr.msk.bf16.mxu0 %vm391_vm13, %v595_v58  ;;  %vm401_vm12 = vmpackc.low %vm178_vm11, %vm177_vm10 }
  0x91   :  { %423 = vmatpush3.bf16.msk.msra.mxu0 %vm391_vm13, %v595_v58  ;;  %vm277_vm13 = vcmask 1044480  }
  0x92   :  { %424 = vmatprep.subr.msk.bf16.mxu0 %vm393_vm0, %v595_v58  ;;  %v319_v15 = vsel %vm277_vm13, %v272_v13, -inf  ;;  %v278_v47 = vsel %vm277_vm13, %v272_v13, 0.0 }
  0x93   :  { %v321_v16 = vmax.f32 %v320_v14, %v319_v15  ;;  %v279_v48 = vadd.f32 %v278_v47, %v276_v46 }
  0x95   :  { %425 = vmatpush3.bf16.msk.msra.mxu0 %vm393_vm0, %v595_v58  ;;  %v322_v17 = vrot.slane %v321_v16, 4  ;;  %v280_v49 = vrot.slane %v279_v48, 4 }
  0x96   :  { %426 = vmatprep.subr.msk.bf16.mxu0 %vm395_vm3, %v595_v58 }
  0x97   :  { %v323_v18 = vmax.f32 %v321_v16, %v322_v17  ;;  %v281_v50 = vadd.f32 %v280_v49, %v279_v48 }
  0x99   :  { %427 = vmatpush3.bf16.msk.msra.mxu0 %vm395_vm3, %v595_v58  ;;  %v324_v19 = vrot.slane %v323_v18, 2  ;;  %v282_v51 = vrot.slane %v281_v50, 2 }
  0x9a   :  { %428 = vmatprep.subr.msk.bf16.mxu0 %vm397_vm6, %v595_v58 }
  0x9b   :  { %v325_v20 = vmax.f32 %v323_v18, %v324_v19  ;;  %v283_v52 = vadd.f32 %v282_v51, %v281_v50 }
  0x9d   :  { %429 = vmatpush3.bf16.msk.msra.mxu0 %vm397_vm6, %v595_v58  ;;  %v326_v21 = vrot.slane %v325_v20, 1  ;;  %v284_v53 = vrot.slane %v283_v52, 1 }
  0x9e   :  { %430 = vmatprep.subr.msk.bf16.mxu0 %vm399_vm9, %v595_v58 }
  0x9f   :  { %v327_v22 = vmax.f32 %v325_v20, %v326_v21  ;;  %v724_v54 = vadd.f32 %v284_v53, %v283_v52 }
  0xa1   :  { %431 = vmatpush3.bf16.msk.msra.mxu0 %vm399_vm9, %v595_v58  ;;  %v705_v23 = vsub.f32 %v270_v11, %v327_v22  ;;  %v707_v24 = vsub.f32 %v271_v12, %v327_v22  ;;  %v709_v25 = vsub.f32 %v272_v13, %v327_v22  ;;  %vm286_vm14 = vcmp.gt.f32.partialorder %v724_v54, 0.0 }
  0xa2   :  { %432 = vmatprep.subr.msk.bf16.mxu0 %vm401_vm12, %v595_v58  ;;  %v403_v56 = vsel %vm286_vm14, 1.0, %v596_v55 }
  0xa3   :  { %v331_v26 = vmul.f32 1.442695, %v705_v23  ;;  %v333_v27 = vmul.f32 1.442695, %v707_v24  ;;  %v335_v28 = vmul.f32 1.442695, %v709_v25 }
  0xa4   :  { %367 = vst [vmem:[#allocation10 + $0x1] sm:$0x1] %v403_v56 }
  0xa5   :  { %433 = vmatpush3.bf16.msk.msra.mxu0 %vm401_vm12, %v595_v58  ;;  %453 = vpow2.f32 %v331_v26 }
  0xa6   :  { %455 = vpow2.f32 %v333_v27 }
  0xa7   :  { %457 = vpow2.f32 %v335_v28 }
  0xa8   :  { %435 = vmatmul.mubr.bf16.vlgmr.msra.gmra.mrb[0].mxu0 %v450_v6 }
  0xaf   :  { %v454_v29 = vpop.eup %453 }
  0xb0   :  { %v456_v30 = vpop.eup %455 }
  0xb1   :  { %v458_v31 = vpop.eup %457  ;;  %v337_v32 = vadd.f32 %v456_v30, %v454_v29 }
  0xb2   :  { %v338_v33 = vsel %vm277_vm13, %v458_v31, 0.0 }
  0xb3   :  { %v339_v34 = vadd.f32 %v338_v33, %v337_v32 }
  0xb5   :  { %v340_v35 = vrot.slane %v339_v34, 4 }
  0xb7   :  { %v341_v36 = vadd.f32 %v340_v35, %v339_v34 }
  0xb9   :  { %v342_v37 = vrot.slane %v341_v36, 2 }
  0xbb   :  { %v343_v38 = vadd.f32 %v342_v37, %v341_v36 }
  0xbd   :  { %v344_v39 = vrot.slane %v343_v38, 1 }
  0xbf   :  { %v345_v40 = vadd.f32 %v344_v39, %v343_v38 }
  0xc1   :  { %459 = vlog2.f32 %v345_v40 }
  0xcb   :  { %v460_v41 = vpop.eup %459 }
  0xcc   :  { %v715_v42 = vmul.f32 0.6931472, %v460_v41 }
  0xce   :  { %v348_v43 = vsub.f32 %v705_v23, %v715_v42  ;;  %v349_v44 = vsub.f32 %v707_v24, %v715_v42  ;;  %v350_v45 = vsub.f32 %v709_v25, %v715_v42 }
 0x17b   :  { %v436_v57 = vpop.f32.mrb[0].mxu0 }
 0x17c   :  { %v250_v58 = vpop.f32.mrb[1].mxu0  ;;  %v275_v60 = vmul.f32 0.5, %v436_v57 }
 0x17d   :  { %v437_v59 = vpop.f32.mrb[2].mxu0  ;;  %v273_v62 = vmul.f32 0.5, %v250_v58 }
 0x17e   :  { %v253_v61 = vpop.f32.mrb[3].mxu0  ;;  %v287_v2 = vsel %vm277_vm13, %v275_v60, -inf }
 0x17f   :  { %v274_v63 = vmul.f32 0.5, %v253_v61 }
 0x181   :  { %v288_v0 = vmax.f32 %v273_v62, %v274_v63 }
 0x183   :  { %v289_v3 = vmax.f32 %v288_v0, %v287_v2 }
 0x185   :  { %v290_v4 = vrot.slane %v289_v3, 4 }
 0x187   :  { %v291_v5 = vmax.f32 %v289_v3, %v290_v4 }
 0x189   :  { %v292_v6 = vrot.slane %v291_v5, 2 }
 0x18b   :  { %v293_v7 = vmax.f32 %v291_v5, %v292_v6 }
 0x18d   :  { %v294_v8 = vrot.slane %v293_v7, 1 }
 0x18f   :  { %v295_v9 = vmax.f32 %v293_v7, %v294_v8 }
 0x191   :  { %v296_v1 = vsub.f32 %v273_v62, %v295_v9  ;;  %v297_v10 = vsub.f32 %v274_v63, %v295_v9  ;;  %v298_v11 = vsub.f32 %v275_v60, %v295_v9 }
 0x193   :  { %v299_v12 = vmul.f32 1.442695, %v296_v1  ;;  %v301_v13 = vmul.f32 1.442695, %v297_v10  ;;  %v303_v14 = vmul.f32 1.442695, %v298_v11 }
 0x195   :  { %461 = vpow2.f32 %v299_v12 }
 0x196   :  { %463 = vpow2.f32 %v301_v13 }
 0x197   :  { %465 = vpow2.f32 %v303_v14 }
 0x19f   :  { %v462_v15 = vpop.eup %461 }
 0x1a0   :  { %v464_v16 = vpop.eup %463 }
 0x1a1   :  { %v466_v17 = vpop.eup %465  ;;  %v305_v18 = vadd.f32 %v464_v16, %v462_v15 }
 0x1a2   :  { %v306_v19 = vsel %vm277_vm13, %v466_v17, 0.0 }
 0x1a3   :  { %v307_v20 = vadd.f32 %v306_v19, %v305_v18 }
 0x1a5   :  { %v308_v21 = vrot.slane %v307_v20, 4 }
 0x1a7   :  { %v309_v22 = vadd.f32 %v308_v21, %v307_v20 }
 0x1a9   :  { %v310_v23 = vrot.slane %v309_v22, 2 }
 0x1ab   :  { %v311_v24 = vadd.f32 %v310_v23, %v309_v22 }
 0x1ad   :  { %v312_v25 = vrot.slane %v311_v24, 1 }
 0x1af   :  { %v313_v26 = vadd.f32 %v312_v25, %v311_v24 }
 0x1b1   :  { %467 = vlog2.f32 %v313_v26 }
 0x1bb   :  { %v468_v27 = vpop.eup %467 }
 0x1bc   :  { %v315_v28 = vmul.f32 0.6931472, %v468_v27 }
 0x1be   :  { %v316_v29 = vsub.f32 %v296_v1, %v315_v28  ;;  %v317_v30 = vsub.f32 %v297_v10, %v315_v28  ;;  %v318_v31 = vsub.f32 %v298_v11, %v315_v28 }
 0x1c0   :  { %v351_v32 = vmul.f32 %v348_v43, %v316_v29  ;;  %v352_v33 = vmul.f32 %v349_v44, %v317_v30  ;;  %v353_v34 = vmul.f32 %v350_v45, %v318_v31 }
 0x1c2   :  { %v354_v35 = vadd.f32 %v352_v33, %v351_v32  ;;  %v355_v36 = vsel %vm277_vm13, %v353_v34, 0.0 }
 0x1c4   :  { %v356_v37 = vadd.f32 %v355_v36, %v354_v35 }
 0x1c6   :  { %v357_v38 = vrot.slane %v356_v37, 4 }
 0x1c8   :  { %v358_v39 = vadd.f32 %v357_v38, %v356_v37 }
 0x1ca   :  { %v359_v40 = vrot.slane %v358_v39, 2 }
 0x1cc   :  { %v360_v41 = vadd.f32 %v359_v40, %v358_v39 }
 0x1ce   :  { %v361_v42 = vrot.slane %v360_v41, 1 }
 0x1d0   :  { %v362_v46 = vadd.f32 %v361_v42, %v360_v41 }
 0x1d2   :  { %v363_v47 = vsel %vm286_vm14, %v362_v46, 0.0 }
 0x1d3   :  { %364 = vst [vmem:[#allocation10] sm:$0x1] %v363_v47 }
 0x1d4   :  { %568 = shalt.err (!%p565_p8)
}
 0x1d5   :  { %s569_s23 = scalar_lea.hbm %s751_s5, 32 }
 0x1d6   :  { %p570_p9 = scmp.ne.s32.totalorder %s751_s5, %s569_s23  ;;  %p573_p10 = scmp.lt.u32.totalorder %s569_s23, %s751_s5 }
 0x1d8   :  { %p575_p11 = pnand %p573_p10, %p570_p9 }
 0x1da   :  { %578 = shalt.err (!%p575_p11)
}
 0x1db   :  { %377 = dma.vmem_to_hbm [thread:$0]  %s375_s19, 32, %s751_s5, [#allocation4]  }
 0x1dc   :  { %585 = dma.done.wait [#allocation4], 32  }
 0x1dd   :  { %586 = vsyncadd [#allocation4], 4294967264 }
 0x1de   :  { %381 = vsyncpa [#allocation3], 1 }
 0x1df   :  { %382 = vsyncpa [#allocation6], 1 }
 0x1e0   :  { %383 = vsyncpa [#allocation9], 1 }
 0x1e1   :  { %384 = vsyncpa [#allocation4], 1 }

</bundles_post_ra>
